<compile_context>
chip_gen: v5e
topology: v5e:2x2
jax: 0.10.0
libtpu: 0.0.40
codegen_flags: <defaults>
</compile_context>

<pallas_src>
import jax
import jax.numpy as jnp
from jax.experimental import pallas as pl
from jax.experimental.pallas import tpu as pltpu


_LANE = 128  # TPU vreg lane width


def _linear_sigmoid_kernel(wb_ref, x_ref, o_ref):
    """Fused Linear(2,1)+Sigmoid on one dense (R, 128) tile of the batch.

    wb_ref: SMEM (3,)        scalar-prefetched params [w0, w1, b]
    x_ref : VMEM (2, R, 128) batch dense across sublanes + lanes
    o_ref : VMEM (R, 128)
    """
    w0 = wb_ref[0]
    w1 = wb_ref[1]
    b = wb_ref[2]
    # Two broadcasted VPU FMAs (no MXU for a 2x1 weight), sigmoid on the EUP.
    y = x_ref[0] * w0 + x_ref[1] * w1 + b
    # TODO(synk): if a v7x bundle dump shows the EUP slot binding, switch to
    # exp(-y) + pl.reciprocal(approx=True); exact sigmoid kept for accuracy.
    o_ref[...] = jax.nn.sigmoid(y).astype(o_ref.dtype)


def binary_classifier_forward(x, weight, bias, *, max_block_rows=4096):
    """y = sigmoid(x @ weight.T + bias).

    x:      (B, 2) float32 (PyTorch Linear input layout)
    weight: (1, 2) float32 (PyTorch Linear weight layout)
    bias:   (1,)   float32
    returns (B, 1) float32
    """
    B, IN = x.shape
    OUT = weight.shape[0]
    assert IN == 2 and OUT == 1, "BinaryClassifier is Linear(2, 1)"
    assert max_block_rows % 8 == 0, "block rows must be a multiple of 8"

    # Lane-dense layout: batch -> (rows, 128) so tiles are dense 8x128 vregs.
    bp = _LANE * pl.cdiv(B, _LANE)       # pad only to a 128 multiple
    n_rows = bp // _LANE

    x_t = x.T.astype(jnp.float32)        # (IN, B)
    if bp != B:
        x_t = jnp.pad(x_t, ((0, 0), (0, bp - B)))
    x_t = x_t.reshape(IN, n_rows, _LANE)

    # All parameters in one tiny scalar-prefetched SMEM array: [w0, w1, b].
    wb = jnp.concatenate([weight.reshape(-1), bias.reshape(-1)]).astype(jnp.float32)

    # Small B: single grid step with everything resident.
    # Large B: 4096-row (~4 MiB) blocks; partial last block is masked by Pallas.
    tile_rows = n_rows if n_rows <= max_block_rows else max_block_rows
    n_tiles = pl.cdiv(n_rows, tile_rows)

    out = pl.pallas_call(
        _linear_sigmoid_kernel,
        out_shape=jax.ShapeDtypeStruct((n_rows, _LANE), jnp.float32),
        grid_spec=pltpu.PrefetchScalarGridSpec(
            num_scalar_prefetch=1,
            grid=(n_tiles,),
            in_specs=[
                pl.BlockSpec((IN, tile_rows, _LANE), lambda i, wb: (0, i, 0)),
            ],
            out_specs=pl.BlockSpec((tile_rows, _LANE), lambda i, wb: (i, 0)),
        ),
        compiler_params=pltpu.CompilerParams(
            dimension_semantics=("parallel",)),
        cost_estimate=pl.CostEstimate(
            flops=4 * bp,                     # 2 mul + 2 add per padded element
            transcendentals=bp,
            bytes_accessed=4 * (bp * IN + bp + IN * OUT + OUT)),
    )(wb, x_t)

    return out.reshape(bp)[:B].reshape(B, OUT)


def _reference(x, weight, bias):
    return jax.nn.sigmoid(x @ weight.T + bias)


if __name__ == "__main__":
    key = jax.random.PRNGKey(0)
    kx, kw, kb, kx2 = jax.random.split(key, 4)

    IN, OUT = 2, 1
    # Deterministic params, mimicking PyTorch's U(-1/sqrt(in), 1/sqrt(in)) init.
    bound = 1.0 / jnp.sqrt(IN)
    weight = jax.random.uniform(kw, (OUT, IN), jnp.float32, -bound, bound)
    bias = jax.random.uniform(kb, (OUT,), jnp.float32, -bound, bound)

    # Small batch (single resident grid step).
    B = 8
    x = jax.random.normal(kx, (B, IN), jnp.float32)
    out = jax.block_until_ready(binary_classifier_forward(x, weight, bias))
    ref = _reference(x, weight, bias)
    assert out.shape == (B, OUT)
    assert jnp.allclose(out, ref, atol=1e-5, rtol=1e-5)

    # Non-multiple-of-128 batch (exercises the pad/slice + masked edge path).
    B2 = 300
    x2 = jax.random.normal(kx2, (B2, IN), jnp.float32)
    out2 = jax.block_until_ready(binary_classifier_forward(x2, weight, bias))
    ref2 = _reference(x2, weight, bias)
    assert out2.shape == (B2, OUT)
    assert jnp.allclose(out2, ref2, atol=1e-5, rtol=1e-5)

    print("KERNEL_OK")
</pallas_src>

<mosaic_0001>
module attributes {stable_mosaic.version = 11 : i64} {
  func.func @_linear_sigmoid_kernel(%arg0: i32, %arg1: memref<3xf32, #tpu.memory_space<smem>>, %arg2: memref<2x1x128xf32, #tpu.memory_space<vmem>>, %arg3: memref<1x128xf32, #tpu.memory_space<vmem>>) attributes {dimension_semantics = [#tpu.dimension_semantics<parallel>], iteration_bounds = array<i64: 1>, scalar_prefetch = 1 : i64, scratch_operands = 0 : i64, tpu.core_type = #tpu.core_type<tc>, window_params = [{transform_indices = @transform_0, window_bounds = array<i64: 2, 1, 128>}, {transform_indices = @transform_1, window_bounds = array<i64: 1, 128>}]} {
    %c0 = arith.constant 0 : index
    %0 = memref.load %arg1[%c0] : memref<3xf32, #tpu.memory_space<smem>>
    %c1 = arith.constant 1 : index
    %1 = memref.load %arg1[%c1] : memref<3xf32, #tpu.memory_space<smem>>
    %c2 = arith.constant 2 : index
    %2 = memref.load %arg1[%c2] : memref<3xf32, #tpu.memory_space<smem>>
    %c0_0 = arith.constant 0 : index
    %c0_1 = arith.constant 0 : index
    %c0_2 = arith.constant 0 : index
    %3 = vector.load %arg2[%c0_0, %c0_1, %c0_2] : memref<2x1x128xf32, #tpu.memory_space<vmem>>, vector<1x1x128xf32>
    %4 = vector.shape_cast %3 : vector<1x1x128xf32> to vector<1x128xf32>
    %5 = vector.broadcast %0 : f32 to vector<1x128xf32>
    %6 = arith.mulf %4, %5 : vector<1x128xf32>
    %c1_3 = arith.constant 1 : index
    %c0_4 = arith.constant 0 : index
    %c0_5 = arith.constant 0 : index
    %7 = vector.load %arg2[%c1_3, %c0_4, %c0_5] : memref<2x1x128xf32, #tpu.memory_space<vmem>>, vector<1x1x128xf32>
    %8 = vector.shape_cast %7 : vector<1x1x128xf32> to vector<1x128xf32>
    %9 = vector.broadcast %1 : f32 to vector<1x128xf32>
    %10 = arith.mulf %8, %9 : vector<1x128xf32>
    %11 = arith.addf %6, %10 : vector<1x128xf32>
    %12 = vector.broadcast %2 : f32 to vector<1x128xf32>
    %13 = arith.addf %11, %12 : vector<1x128xf32>
    %14 = arith.negf %13 : vector<1x128xf32>
    %15 = math.exp %14 : vector<1x128xf32>
    %cst = arith.constant 1.000000e+00 : f32
    %16 = vector.broadcast %cst : f32 to vector<1x128xf32>
    %17 = arith.addf %16, %15 : vector<1x128xf32>
    %18 = arith.divf %16, %17 : vector<1x128xf32>
    %c0_6 = arith.constant 0 : index
    %c0_7 = arith.constant 0 : index
    %19 = vector.load %arg3[%c0_6, %c0_7] : memref<1x128xf32, #tpu.memory_space<vmem>>, vector<1x128xf32>
    tpu.vector_store %arg3[%c0_6, %c0_7], %18 {strides = array<i32>} : memref<1x128xf32, #tpu.memory_space<vmem>>, vector<1x128xf32>,
    return
  }
  func.func @transform_0(%arg0: i32, %arg1: memref<3xf32, #tpu.memory_space<smem>>) -> (i32, i32, i32) {
    %c0_i32 = arith.constant 0 : i32
    %c0_i32_0 = arith.constant 0 : i32
    %c0_i32_1 = arith.constant 0 : i32
    return %c0_i32, %arg0, %c0_i32_0 : i32, i32, i32
  }
  func.func @transform_1(%arg0: i32, %arg1: memref<3xf32, #tpu.memory_space<smem>>) -> (i32, i32) {
    %c0_i32 = arith.constant 0 : i32
    %c0_i32_0 = arith.constant 0 : i32
    return %arg0, %c0_i32 : i32, i32
  }
}

</mosaic_0001>

<bundles_post_ra>
// kernel: tpu_custom_call.1
= control target key start
LH: loop header
LB: loop body
LE: loop exit
PB: predicated region body
PF: predicated region fallthrough
CT: control target
= control target key end

     0   :  { %s162_s12 = smov [#allocation3]   ;;  %s191_s0 = inlined_call_operand.hbm [shape: f32[3], index: 0, kind: input, shape index: {}]   ;;  %s192_s1 = inlined_call_operand.hbm [shape: f32[2,1,128], index: 1, kind: input, shape index: {}]   ;;  %s193_s2 = inlined_call_operand.hbm [shape: f32[1,128], index: 2, kind: output, shape index: {}]  }
   0x1   :  { %s8_s11 = sshll.u32 %s191_s0, 4  ;;  %s9_s11 = int_to_ptr.hbm [resolvable:$true] %s8_s11 }
   0x2   :  { %11 = dma.hbm_to_smem %s9_s11, 16, %s162_s12, [#allocation2] }
   0x3   :  { %156 = dma.done.wait [#allocation2], 16 }
   0x4   :  { %157 = vsyncadd [#allocation2], 4294967280 }
   0x5   :  { %14 = sfence }
   0x6   :  { %15 = vsyncpa [#allocation5], 0 }
   0x7   :  { %16 = vsyncpa [#allocation6], 0  ;;  %s21_s15 = sshll.u32 %s192_s1, 4  ;;  %s163_s16 = smov [#allocation4]   ;;  %s22_s15 = int_to_ptr.hbm [resolvable:$true] %s21_s15 }
   0x8   :  { %s23_s17 = sshll.u32 %s163_s16, 4  ;;  %s164_s18 = smov 16   ;;  %s24_s17 = int_to_ptr.vmem [resolvable:$true] %s23_s17 }
   0x9   :  { %s165_s19 = smov 1  }
   0xa   :  { %29 = dma.hbm_to_vmem [thread:$0]  %s22_s15, 32, %s24_s17, [#allocation5], %s164_s18, %s164_s18, %s165_s19  }
   0xb   :  { %158 = dma.done.wait [#allocation5], 32  }
   0xc   :  { %159 = vsyncadd [#allocation5], 4294967264  ;;  %s34_s0 = sld [smem:[#allocation3]]  ;;  %v37_v0 = vld [vmem:[#allocation4] sm:$0x1]  ;;  %s166_s1 = smov [#allocation7]  }
   0xd   :  { %s84_s20 = sld [smem:[#allocation3 + $0x1]]  ;;  %v41_v2 = vld [vmem:[#allocation4 + $0x1] sm:$0x1]  ;;  %s72_s22 = sshll.u32 %s166_s1, 4  ;;  %s73_s22 = int_to_ptr.vmem [resolvable:$true] %s72_s22 }
   0xe   :  { %s85_s21 = sld [smem:[#allocation3 + $0x2]]  ;;  %s74_s25 = sshll.u32 %s193_s2, 4  ;;  %s75_s25 = int_to_ptr.hbm [resolvable:$true] %s74_s25 }
  0x12   :  { %v38_v1 = vstv %s34_s0 }
  0x13   :  { %v39_v3 = vmul.f32 %v38_v1, %v37_v0  ;;  %v42_v4 = vstv %s84_s20 }
  0x14   :  { %v43_v5 = vmul.f32 %v42_v4, %v41_v2  ;;  %v45_v6 = vstv %s85_s21 }
  0x16   :  { %v44_v7 = vadd.f32 %v43_v5, %v39_v3 }
  0x18   :  { %v46_v8 = vadd.f32 %v45_v6, %v44_v7 }
  0x1a   :  { %v86_v9 = vmul.f32 -1.442695, %v46_v8 }
  0x1c   :  { %92 = vpow2.f32 %v86_v9 }
  0x22   :  { %v93_v10 = vpop.eup %92 }
  0x23   :  { %v50_v11 = vadd.f32 1.0, %v93_v10 }
  0x25   :  { %94 = vrcp.f32 %v50_v11  ;;  %v62_v14 = vand.u32 2147483648, %v50_v11  ;;  %vm56_vm0 = vweird.f32 %v50_v11  ;;  %v60_v16 = vand.u32 2147483647, %v50_v11 }
  0x27   :  { %v63_v18 = vor.u32 1.1754944e-38, %v62_v14  ;;  %vm61_vm3 = vcmp.eq.f32.partialorder %v60_v16, 8.507059e+37 }
  0x2b   :  { %v95_v12 = vpop.eup %94 }
  0x2c   :  { %v52_v13 = vmul.f32 %v95_v12, %v50_v11  ;;  %vm57_vm1 = vweird.f32 %v95_v12 }
  0x2d   :  { %vm58_vm2 = vmor %vm56_vm0, %vm57_vm1 }
  0x2e   :  { %v53_v15 = vsub.f32 1.0, %v52_v13 }
  0x30   :  { %v54_v17 = vmul.f32 %v95_v12, %v53_v15 }
  0x32   :  { %v55_v19 = vadd.f32 %v95_v12, %v54_v17 }
  0x34   :  { %v59_v20 = vsel %vm58_vm2, %v95_v12, %v55_v19 }
  0x35   :  { %v64_v21 = vsel %vm61_vm3, %v63_v18, %v59_v20 }
  0x36   :  { %66 = vst [vmem:[#allocation7] sm:$0x1] %v64_v21 }
  0x37   :  { %77 = dma.vmem_to_hbm [thread:$0]  %s73_s22, 16, %s75_s25, [#allocation6]  }
  0x38   :  { %160 = dma.done.wait [#allocation6], 16  }
  0x39   :  { %161 = vsyncadd [#allocation6], 4294967280 }
  0x3a   :  { %82 = vsyncpa [#allocation5], 1 }
  0x3b   :  { %83 = vsyncpa [#allocation6], 1 }

</bundles_post_ra>
